<compile_context>
chip_gen: v7x
topology: tpu7x:2x2x1
jax: 0.10.0
libtpu: 0.0.40
codegen_flags: <defaults>
</compile_context>

<pallas_src>
import functools

import jax
import jax.numpy as jnp
from jax.experimental import pallas as pl
from jax.experimental.pallas import tpu as pltpu

BN_EPS = 1e-5
NEG_INF = -1e30   # finite "-inf" so masked-score arithmetic never produces inf/NaN


def _spacca_kernel(x2_ref, x1t_ref, w_ref, b_ref, o_ref,
                   q_scr, m_scr, l_scr, acc_scr,
                   *, hw, tk, need_mask):
    """One batch element per (outer) grid step, online softmax over kv tiles.

    Shapes inside the kernel (G=groups, D=padded channels/group, L=padded hw,
    T=kv tile):
      x2_ref : (1, G, D, L) bf16        x1t_ref: (1, G, T, D) bf16 (x1^T tile)
      w_ref  : (3, G, D, D) bf16        [0]=scale*Wq  [1]=Wk  [2]=BN-folded Wv
      b_ref  : (2, G, D, 1) f32         [0]=scale*bq  [1]=BN-folded output bias
      o_ref  : (1, G, D, L) f32
      scratch: q (G,D,L) bf16, m/l (G,1,L) f32, acc (G,D,L) f32
    """
    kv = pl.program_id(1)

    @pl.when(kv == 0)
    def _():
        # q = (scale*Wq) @ x2 + scale*bq  (softmax scale pre-folded in wrapper)
        q = jnp.einsum("gde,gei->gdi", w_ref[0], x2_ref[0],
                       preferred_element_type=jnp.float32) + b_ref[0]
        q_scr[...] = q.astype(q_scr.dtype)
        m_scr[...] = jnp.full(m_scr.shape, NEG_INF, m_scr.dtype)
        l_scr[...] = jnp.zeros(l_scr.shape, l_scr.dtype)
        acc_scr[...] = jnp.zeros(acc_scr.shape, acc_scr.dtype)

    x1t = x1t_ref[0]                                    # (G, T, D) bf16
    # k^T tile (G, T, D).  The conv-k bias adds the same constant to every
    # score of a query row and cancels exactly in the softmax, so it is dropped.
    kt = jnp.einsum("gte,gde->gtd", x1t, w_ref[1],
                    preferred_element_type=jnp.float32)
    # v tile (G, D, T); eval-mode BN scale already folded into Wv.
    v = jnp.einsum("gde,gte->gdt", w_ref[2], x1t,
                   preferred_element_type=jnp.float32)

    # scores: kv positions on sublanes, query positions on lanes -> (G, T, L)
    s = jnp.einsum("gtd,gdi->gti", kt.astype(jnp.bfloat16), q_scr[...],
                   preferred_element_type=jnp.float32)
    if need_mask:   # static branch: mask kv positions that are pure padding
        col = jax.lax.broadcasted_iota(jnp.int32, s.shape, 1) + kv * tk
        s = jnp.where(col < hw, s, NEG_INF)

    # online softmax with deferred normalization
    m_prev = m_scr[...]                                 # (G, 1, L)
    m_new = jnp.maximum(m_prev, jnp.max(s, axis=1, keepdims=True))
    alpha = jnp.exp(m_prev - m_new)
    p = jnp.exp(s - m_new)                              # (G, T, L) f32
    l_scr[...] = alpha * l_scr[...] + jnp.sum(p, axis=1, keepdims=True)
    acc_scr[...] = alpha * acc_scr[...] + jnp.einsum(
        "gdt,gti->gdi", v.astype(jnp.bfloat16), p.astype(jnp.bfloat16),
        preferred_element_type=jnp.float32)
    m_scr[...] = m_new

    @pl.when(kv == pl.num_programs(1) - 1)
    def _():
        # normalize once, add BN-folded bias, ReLU.
        out = acc_scr[...] * pl.reciprocal(l_scr[...], approx=True) + b_ref[1]
        o_ref[0] = jnp.maximum(out, 0.0).astype(o_ref.dtype)


def _pick_kv_tile(hwpad, groups, budget_bytes=8 * 1024 * 1024):
    """Largest kv tile (multiple of 128, <=512) dividing hwpad whose f32
    score tile fits the budget."""
    for tk in (512, 384, 256, 128):
        if hwpad % tk == 0 and groups * tk * hwpad * 4 <= budget_bytes:
            return tk
    return 128


def _vmem_bytes(groups, dpad, hwpad, tk):
    lane = 128
    dl = max(dpad, lane)                       # lane padding of a short last dim
    return (
        2 * groups * dpad * hwpad * 2          # x2 blocks (double-buffered, bf16)
        + 2 * groups * tk * dl * 2             # x1^T kv tiles
        + 2 * 3 * groups * dpad * dl * 2       # packed weights
        + 2 * 2 * groups * dpad * lane * 4     # packed biases
        + 2 * groups * dpad * hwpad * 4        # output blocks (f32)
        + groups * dpad * hwpad * (2 + 4)      # q + acc scratch
        + 2 * groups * 8 * hwpad * 4           # m / l scratch (sublane padded)
        + 3 * groups * tk * hwpad * 4          # score / p temporaries headroom
    )


def spacca_forward(x1, x2, params, groups):
    b, c, h, w = x1.shape
    assert x2.shape == (b, c, h, w) and c % groups == 0
    d = c // groups
    hw = h * w
    scale = float(d) ** -0.5

    dpad = ((d + 15) // 16) * 16          # bf16 sublane packing
    hwpad = ((hw + 127) // 128) * 128     # lane-dense spatial axis
    tk = _pick_kv_tile(hwpad, groups)
    nk = hwpad // tk

    # ---- fold + pack parameters (cheap one-off XLA ops in the wrapper) ----
    inv_std = jax.lax.rsqrt(params["var"] + BN_EPS)           # (g, d, 1)
    bn_scale = params["gamma"] * inv_std                      # (g, d, 1)
    wq_s = params["wq"] * scale                               # fold softmax scale
    bq_s = params["bq"] * scale
    wv_f = params["wv"] * bn_scale                            # fold BN scale into Wv
    b_out = bn_scale * (params["bv"] - params["mean"]) + params["beta"]
    # params["bk"] is intentionally unused: it cancels in the softmax.

    dpd = dpad - d
    pad2 = lambda a: jnp.pad(a, ((0, 0), (0, dpd), (0, dpd)))
    pad1 = lambda a: jnp.pad(a, ((0, 0), (0, dpd), (0, 0)))
    w_pack = jnp.stack([pad2(wq_s), pad2(params["wk"]), pad2(wv_f)]
                       ).astype(jnp.bfloat16)                 # (3, g, dpad, dpad)
    b_pack = jnp.stack([pad1(bq_s), pad1(b_out)]).astype(jnp.float32)  # (2,g,dpad,1)

    # ---- inputs: bf16, zero padded; x1 pre-transposed to (hw, d) so every
    #      in-kernel contraction is a plain / rhs-transposed MXU matmul ----
    def prep(x):
        xr = x.reshape(b, groups, d, hw).astype(jnp.bfloat16)
        return jnp.pad(xr, ((0, 0), (0, 0), (0, dpd), (0, hwpad - hw)))

    x2r = prep(x2)                                 # (b, g, dpad, hwpad)
    x1t = jnp.swapaxes(prep(x1), 2, 3)             # (b, g, hwpad, dpad)

    vmem_limit = int(min(64 * 2 ** 20,
                         max(32 * 2 ** 20, 2 * _vmem_bytes(groups, dpad, hwpad, tk))))

    out = pl.pallas_call(
        functools.partial(_spacca_kernel, hw=hw, tk=tk, need_mask=(hwpad != hw)),
        out_shape=jax.ShapeDtypeStruct((b, groups, dpad, hwpad), jnp.float32),
        grid_spec=pltpu.PrefetchScalarGridSpec(
            num_scalar_prefetch=0,
            grid=(b, nk),                          # kv (reduction) axis innermost
            in_specs=[
                pl.BlockSpec((1, groups, dpad, hwpad), lambda bi, ki: (bi, 0, 0, 0)),
                pl.BlockSpec((1, groups, tk, dpad), lambda bi, ki: (bi, 0, ki, 0)),
                pl.BlockSpec((3, groups, dpad, dpad), lambda bi, ki: (0, 0, 0, 0)),
                pl.BlockSpec((2, groups, dpad, 1), lambda bi, ki: (0, 0, 0, 0)),
            ],
            out_specs=pl.BlockSpec((1, groups, dpad, hwpad),
                                   lambda bi, ki: (bi, 0, 0, 0)),
            scratch_shapes=[
                pltpu.VMEM((groups, dpad, hwpad), jnp.bfloat16),   # q
                pltpu.VMEM((groups, 1, hwpad), jnp.float32),       # running max
                pltpu.VMEM((groups, 1, hwpad), jnp.float32),       # running sum
                pltpu.VMEM((groups, dpad, hwpad), jnp.float32),    # accumulator
            ],
        ),
        compiler_params=pltpu.CompilerParams(
            dimension_semantics=("parallel", "arbitrary"),
            vmem_limit_bytes=vmem_limit,
        ),
    )(x2r, x1t, w_pack, b_pack)

    return out[:, :, :d, :hw].reshape(b, c, h, w)


def spacca_reference(x1, x2, params, groups):
    """Pure-JAX f32 reference mirroring the PyTorch forward (eval-mode BN)."""
    b, c, h, w = x1.shape
    d = c // groups
    hw = h * w
    scale = float(d) ** -0.5
    x1r = x1.reshape(b, groups, d, hw)
    x2r = x2.reshape(b, groups, d, hw)

    def gconv(x, wg, bg):  # grouped 1x1 conv: (g,d,d) @ (b,g,d,hw) + bias
        return jnp.einsum("gij,bgjl->bgil", wg, x) + bg[None]

    q = gconv(x2r, params["wq"], params["bq"])             # (b, g, d, hw)
    k = gconv(x1r, params["wk"], params["bk"])
    v = gconv(x1r, params["wv"], params["bv"])

    attn = jnp.einsum("bgdl,bgdm->bglm", q, k) * scale      # (b, g, hw, hw)
    attn = jax.nn.softmax(attn, axis=-1)
    out = jnp.einsum("bglm,bgdm->bgdl", attn, v)            # (b, g, d, hw)

    inv_std = jax.lax.rsqrt(params["var"] + BN_EPS)
    out = (out - params["mean"][None]) * (params["gamma"] * inv_std)[None] \
          + params["beta"][None]
    return jnp.maximum(out, 0.0).reshape(b, c, h, w)


def init_params(key, width, groups):
    """Deterministic parameters matching the shapes of SpaCCA.__init__."""
    d = width // groups
    bound = 1.0 / (d ** 0.5)          # PyTorch default conv init bound
    keys = jax.random.split(key, 6)

    def u(k, shape):
        return jax.random.uniform(k, shape, jnp.float32, -bound, bound)

    # Conv2d(width, width, groups, k=1) weight (width, d, 1, 1) -> (g, d, d)
    return {
        "wq": u(keys[0], (width, d)).reshape(groups, d, d),
        "bq": u(keys[1], (width,)).reshape(groups, d, 1),
        "wk": u(keys[2], (width, d)).reshape(groups, d, d),
        "bk": u(keys[3], (width,)).reshape(groups, d, 1),
        "wv": u(keys[4], (width, d)).reshape(groups, d, d),
        "bv": u(keys[5], (width,)).reshape(groups, d, 1),
        # BatchNorm2d defaults: gamma=1, beta=0, running_mean=0, running_var=1
        "gamma": jnp.ones((groups, d, 1), jnp.float32),
        "beta": jnp.zeros((groups, d, 1), jnp.float32),
        "mean": jnp.zeros((groups, d, 1), jnp.float32),
        "var": jnp.ones((groups, d, 1), jnp.float32),
    }


if __name__ == "__main__":
    width, groups = 8, 2          # stride == 1 configuration
    b, h, w = 2, 8, 8

    key = jax.random.PRNGKey(0)
    kx1, kx2, kp = jax.random.split(key, 3)
    x1 = jax.random.normal(kx1, (b, width, h, w), jnp.float32)
    x2 = jax.random.normal(kx2, (b, width, h, w), jnp.float32)
    params = init_params(kp, width, groups)

    # Compare against a reference fed the same bf16-quantized operands the
    # kernel uses, isolating kernel correctness from intentional bf16 casts.
    rq = lambda a: a.astype(jnp.bfloat16).astype(jnp.float32)
    x1q, x2q = rq(x1), rq(x2)
    params_q = {k: (rq(v) if k in ("wq", "wk", "wv") else v)
                for k, v in params.items()}

    out = spacca_forward(x1q, x2q, params_q, groups)
    out = jax.block_until_ready(out)

    ref = spacca_reference(x1q, x2q, params_q, groups)
    assert out.shape == (b, width, h, w)
    assert jnp.allclose(out, ref, atol=3e-2, rtol=3e-2), \
        f"max diff {jnp.max(jnp.abs(out - ref))}"

    print("KERNEL_OK")
</pallas_src>

<mosaic_0001>
module attributes {stable_mosaic.version = 11 : i64} {
  func.func @_spacca_kernel(%arg0: i32, %arg1: i32, %arg2: memref<1x2x16x128xbf16, #tpu.memory_space<vmem>>, %arg3: memref<1x2x128x16xbf16, #tpu.memory_space<vmem>>, %arg4: memref<3x2x16x16xbf16, #tpu.memory_space<vmem>>, %arg5: memref<2x2x16x1xf32, #tpu.memory_space<vmem>>, %arg6: memref<1x2x16x128xf32, #tpu.memory_space<vmem>>, %arg7: memref<2x16x128xbf16, #tpu.memory_space<vmem>>, %arg8: memref<2x1x128xf32, #tpu.memory_space<vmem>>, %arg9: memref<2x1x128xf32, #tpu.memory_space<vmem>>, %arg10: memref<2x16x128xf32, #tpu.memory_space<vmem>>) attributes {dimension_semantics = [#tpu.dimension_semantics<parallel>, #tpu.dimension_semantics<arbitrary>], iteration_bounds = array<i64: 2, 1>, scalar_prefetch = 0 : i64, scratch_operands = 4 : i64, tpu.core_type = #tpu.core_type<tc>, window_params = [{transform_indices = @transform_0, window_bounds = array<i64: 1, 2, 16, 128>}, {transform_indices = @transform_1, window_bounds = array<i64: 1, 2, 128, 16>}, {pipeline_mode = #tpu.pipeline_mode<synchronous>, transform_indices = @transform_2, window_bounds = array<i64: 3, 2, 16, 16>}, {pipeline_mode = #tpu.pipeline_mode<synchronous>, transform_indices = @transform_3, window_bounds = array<i64: 2, 2, 16, 1>}, {transform_indices = @transform_4, window_bounds = array<i64: 1, 2, 16, 128>}]} {
    %c0_i32 = arith.constant 0 : i32
    %0 = arith.cmpi eq, %arg1, %c0_i32 : i32
    %1 = arith.extui %0 : i1 to i32
    %c0_i32_0 = arith.constant 0 : i32
    %2 = arith.cmpi ne, %1, %c0_i32_0 : i32
    scf.if %2 {
      %c0_39 = arith.constant 0 : index
      %c0_40 = arith.constant 0 : index
      %c0_41 = arith.constant 0 : index
      %c0_42 = arith.constant 0 : index
      %49 = vector.load %arg4[%c0_39, %c0_40, %c0_41, %c0_42] : memref<3x2x16x16xbf16, #tpu.memory_space<vmem>>, vector<1x2x16x16xbf16>
      %50 = vector.shape_cast %49 : vector<1x2x16x16xbf16> to vector<2x16x16xbf16>
      %c0_43 = arith.constant 0 : index
      %c0_44 = arith.constant 0 : index
      %c0_45 = arith.constant 0 : index
      %c0_46 = arith.constant 0 : index
      %51 = vector.load %arg2[%c0_43, %c0_44, %c0_45, %c0_46] : memref<1x2x16x128xbf16, #tpu.memory_space<vmem>>, vector<1x2x16x128xbf16>
      %52 = vector.shape_cast %51 : vector<1x2x16x128xbf16> to vector<2x16x128xbf16>
      "tpu.trace_start"() <{level = 10 : i32, message = "gde,gei->gdi"}> : () -> ()
      %cst_47 = arith.constant dense<0.000000e+00> : vector<2x16x128xf32>
      %53 = tpu.matmul %50, %52, %cst_47 {dimension_numbers = #tpu.dot_dimension_numbers<[2], [1], [1], [2], [0, 0, 0, 1, 1, 2], [0], [0]>} : vector<2x16x16xbf16>, vector<2x16x128xbf16>, vector<2x16x128xf32> -> vector<2x16x128xf32>
      "tpu.trace_stop"() : () -> ()
      %c0_48 = arith.constant 0 : index
      %c0_49 = arith.constant 0 : index
      %c0_50 = arith.constant 0 : index
      %c0_51 = arith.constant 0 : index
      %54 = vector.load %arg5[%c0_48, %c0_49, %c0_50, %c0_51] : memref<2x2x16x1xf32, #tpu.memory_space<vmem>>, vector<1x2x16x1xf32>
      %55 = vector.shape_cast %54 : vector<1x2x16x1xf32> to vector<2x16x1xf32>
      %56 = vector.broadcast %55 : vector<2x16x1xf32> to vector<2x16x128xf32>
      %57 = arith.addf %53, %56 : vector<2x16x128xf32>
      %58 = arith.truncf %57 : vector<2x16x128xf32> to vector<2x16x128xbf16>
      %c0_52 = arith.constant 0 : index
      %c0_53 = arith.constant 0 : index
      %c0_54 = arith.constant 0 : index
      %59 = vector.load %arg7[%c0_52, %c0_53, %c0_54] : memref<2x16x128xbf16, #tpu.memory_space<vmem>>, vector<2x16x128xbf16>
      tpu.vector_store %arg7[%c0_52, %c0_53, %c0_54], %58 {strides = array<i32>} : memref<2x16x128xbf16, #tpu.memory_space<vmem>>, vector<2x16x128xbf16>,
      %cst_55 = arith.constant -1.000000e+30 : f32
      %60 = vector.broadcast %cst_55 : f32 to vector<2x1x128xf32>
      %c0_56 = arith.constant 0 : index
      %c0_57 = arith.constant 0 : index
      %c0_58 = arith.constant 0 : index
      %61 = vector.load %arg8[%c0_56, %c0_57, %c0_58] : memref<2x1x128xf32, #tpu.memory_space<vmem>>, vector<2x1x128xf32>
      tpu.vector_store %arg8[%c0_56, %c0_57, %c0_58], %60 {strides = array<i32>} : memref<2x1x128xf32, #tpu.memory_space<vmem>>, vector<2x1x128xf32>,
      %cst_59 = arith.constant 0.000000e+00 : f32
      %62 = vector.broadcast %cst_59 : f32 to vector<2x1x128xf32>
      %c0_60 = arith.constant 0 : index
      %c0_61 = arith.constant 0 : index
      %c0_62 = arith.constant 0 : index
      %63 = vector.load %arg9[%c0_60, %c0_61, %c0_62] : memref<2x1x128xf32, #tpu.memory_space<vmem>>, vector<2x1x128xf32>
      tpu.vector_store %arg9[%c0_60, %c0_61, %c0_62], %62 {strides = array<i32>} : memref<2x1x128xf32, #tpu.memory_space<vmem>>, vector<2x1x128xf32>,
      %cst_63 = arith.constant 0.000000e+00 : f32
      %64 = vector.broadcast %cst_63 : f32 to vector<2x16x128xf32>
      %c0_64 = arith.constant 0 : index
      %c0_65 = arith.constant 0 : index
      %c0_66 = arith.constant 0 : index
      %65 = vector.load %arg10[%c0_64, %c0_65, %c0_66] : memref<2x16x128xf32, #tpu.memory_space<vmem>>, vector<2x16x128xf32>
      tpu.vector_store %arg10[%c0_64, %c0_65, %c0_66], %64 {strides = array<i32>} : memref<2x16x128xf32, #tpu.memory_space<vmem>>, vector<2x16x128xf32>,
    } else {
    }
    %c0 = arith.constant 0 : index
    %c0_1 = arith.constant 0 : index
    %c0_2 = arith.constant 0 : index
    %c0_3 = arith.constant 0 : index
    %3 = vector.load %arg3[%c0, %c0_1, %c0_2, %c0_3] : memref<1x2x128x16xbf16, #tpu.memory_space<vmem>>, vector<1x2x128x16xbf16>
    %4 = vector.shape_cast %3 : vector<1x2x128x16xbf16> to vector<2x128x16xbf16>
    %c1 = arith.constant 1 : index
    %c0_4 = arith.constant 0 : index
    %c0_5 = arith.constant 0 : index
    %c0_6 = arith.constant 0 : index
    %5 = vector.load %arg4[%c1, %c0_4, %c0_5, %c0_6] : memref<3x2x16x16xbf16, #tpu.memory_space<vmem>>, vector<1x2x16x16xbf16>
    %6 = vector.shape_cast %5 : vector<1x2x16x16xbf16> to vector<2x16x16xbf16>
    "tpu.trace_start"() <{level = 10 : i32, message = "gte,gde->gtd"}> : () -> ()
    %cst = arith.constant dense<0.000000e+00> : vector<2x128x16xf32>
    %7 = tpu.matmul %4, %6, %cst {dimension_numbers = #tpu.dot_dimension_numbers<[2], [2], [1], [1], [0, 0, 0, 1, 1, 1], [0], [0]>} : vector<2x128x16xbf16>, vector<2x16x16xbf16>, vector<2x128x16xf32> -> vector<2x128x16xf32>
    "tpu.trace_stop"() : () -> ()
    %c2 = arith.constant 2 : index
    %c0_7 = arith.constant 0 : index
    %c0_8 = arith.constant 0 : index
    %c0_9 = arith.constant 0 : index
    %8 = vector.load %arg4[%c2, %c0_7, %c0_8, %c0_9] : memref<3x2x16x16xbf16, #tpu.memory_space<vmem>>, vector<1x2x16x16xbf16>
    %9 = vector.shape_cast %8 : vector<1x2x16x16xbf16> to vector<2x16x16xbf16>
    "tpu.trace_start"() <{level = 10 : i32, message = "gde,gte->gdt"}> : () -> ()
    %cst_10 = arith.constant dense<0.000000e+00> : vector<2x16x128xf32>
    %10 = tpu.matmul %9, %4, %cst_10 {dimension_numbers = #tpu.dot_dimension_numbers<[2], [2], [1], [1], [0, 0, 0, 1, 1, 1], [0], [0]>} : vector<2x16x16xbf16>, vector<2x128x16xbf16>, vector<2x16x128xf32> -> vector<2x16x128xf32>
    "tpu.trace_stop"() : () -> ()
    %11 = arith.truncf %7 : vector<2x128x16xf32> to vector<2x128x16xbf16>
    %c0_11 = arith.constant 0 : index
    %c0_12 = arith.constant 0 : index
    %c0_13 = arith.constant 0 : index
    %12 = vector.load %arg7[%c0_11, %c0_12, %c0_13] : memref<2x16x128xbf16, #tpu.memory_space<vmem>>, vector<2x16x128xbf16>
    "tpu.trace_start"() <{level = 10 : i32, message = "gtd,gdi->gti"}> : () -> ()
    %cst_14 = arith.constant dense<0.000000e+00> : vector<2x128x128xf32>
    %13 = tpu.matmul %11, %12, %cst_14 {dimension_numbers = #tpu.dot_dimension_numbers<[2], [1], [1], [2], [0, 0, 0, 1, 1, 2], [0], [0]>} : vector<2x128x16xbf16>, vector<2x16x128xbf16>, vector<2x128x128xf32> -> vector<2x128x128xf32>
    "tpu.trace_stop"() : () -> ()
    %14 = tpu.iota {dimensions = array<i32: 1>} : vector<2x128x128xi32>
    %c128_i32 = arith.constant 128 : i32
    %15 = arith.muli %arg1, %c128_i32 : i32
    %16 = vector.broadcast %15 : i32 to vector<2x128x128xi32>
    %17 = arith.addi %14, %16 : vector<2x128x128xi32>
    %c64_i32 = arith.constant 64 : i32
    %18 = vector.broadcast %c64_i32 : i32 to vector<2x128x128xi32>
    %19 = arith.cmpi slt, %17, %18 : vector<2x128x128xi32>
    %cst_15 = arith.constant -1.000000e+30 : f32
    %20 = vector.broadcast %cst_15 : f32 to vector<2x128x128xf32>
    %21 = arith.select %19, %13, %20 : vector<2x128x128xi1>, vector<2x128x128xf32>
    %c0_16 = arith.constant 0 : index
    %c0_17 = arith.constant 0 : index
    %c0_18 = arith.constant 0 : index
    %22 = vector.load %arg8[%c0_16, %c0_17, %c0_18] : memref<2x1x128xf32, #tpu.memory_space<vmem>>, vector<2x1x128xf32>
    %cst_19 = arith.constant dense<0xFF800000> : vector<2x128xf32>
    %23 = vector.multi_reduction <maximumf>, %21, %cst_19 [1] : vector<2x128x128xf32> to vector<2x128xf32>
    %24 = vector.shape_cast %23 : vector<2x128xf32> to vector<2x1x128xf32>
    %25 = arith.maximumf %22, %24 : vector<2x1x128xf32>
    %26 = arith.subf %22, %25 : vector<2x1x128xf32>
    %27 = math.exp %26 : vector<2x1x128xf32>
    %28 = vector.broadcast %25 : vector<2x1x128xf32> to vector<2x128x128xf32>
    %29 = arith.subf %21, %28 : vector<2x128x128xf32>
    %30 = math.exp %29 : vector<2x128x128xf32>
    %c0_20 = arith.constant 0 : index
    %c0_21 = arith.constant 0 : index
    %c0_22 = arith.constant 0 : index
    %31 = vector.load %arg9[%c0_20, %c0_21, %c0_22] : memref<2x1x128xf32, #tpu.memory_space<vmem>>, vector<2x1x128xf32>
    %32 = arith.mulf %27, %31 : vector<2x1x128xf32>
    %cst_23 = arith.constant dense<0.000000e+00> : vector<2x128xf32>
    %33 = vector.multi_reduction <add>, %30, %cst_23 [1] : vector<2x128x128xf32> to vector<2x128xf32>
    %34 = vector.shape_cast %33 : vector<2x128xf32> to vector<2x1x128xf32>
    %35 = arith.addf %32, %34 : vector<2x1x128xf32>
    %c0_24 = arith.constant 0 : index
    %c0_25 = arith.constant 0 : index
    %c0_26 = arith.constant 0 : index
    %36 = vector.load %arg9[%c0_24, %c0_25, %c0_26] : memref<2x1x128xf32, #tpu.memory_space<vmem>>, vector<2x1x128xf32>
    tpu.vector_store %arg9[%c0_24, %c0_25, %c0_26], %35 {strides = array<i32>} : memref<2x1x128xf32, #tpu.memory_space<vmem>>, vector<2x1x128xf32>,
    %c0_27 = arith.constant 0 : index
    %c0_28 = arith.constant 0 : index
    %c0_29 = arith.constant 0 : index
    %37 = vector.load %arg10[%c0_27, %c0_28, %c0_29] : memref<2x16x128xf32, #tpu.memory_space<vmem>>, vector<2x16x128xf32>
    %38 = vector.broadcast %27 : vector<2x1x128xf32> to vector<2x16x128xf32>
    %39 = arith.mulf %38, %37 : vector<2x16x128xf32>
    %40 = arith.truncf %10 : vector<2x16x128xf32> to vector<2x16x128xbf16>
    %41 = arith.truncf %30 : vector<2x128x128xf32> to vector<2x128x128xbf16>
    "tpu.trace_start"() <{level = 10 : i32, message = "gdt,gti->gdi"}> : () -> ()
    %cst_30 = arith.constant dense<0.000000e+00> : vector<2x16x128xf32>
    %42 = tpu.matmul %40, %41, %cst_30 {dimension_numbers = #tpu.dot_dimension_numbers<[2], [1], [1], [2], [0, 0, 0, 1, 1, 2], [0], [0]>} : vector<2x16x128xbf16>, vector<2x128x128xbf16>, vector<2x16x128xf32> -> vector<2x16x128xf32>
    "tpu.trace_stop"() : () -> ()
    %43 = arith.addf %39, %42 : vector<2x16x128xf32>
    %c0_31 = arith.constant 0 : index
    %c0_32 = arith.constant 0 : index
    %c0_33 = arith.constant 0 : index
    %44 = vector.load %arg10[%c0_31, %c0_32, %c0_33] : memref<2x16x128xf32, #tpu.memory_space<vmem>>, vector<2x16x128xf32>
    tpu.vector_store %arg10[%c0_31, %c0_32, %c0_33], %43 {strides = array<i32>} : memref<2x16x128xf32, #tpu.memory_space<vmem>>, vector<2x16x128xf32>,
    %c0_34 = arith.constant 0 : index
    %c0_35 = arith.constant 0 : index
    %c0_36 = arith.constant 0 : index
    %45 = vector.load %arg8[%c0_34, %c0_35, %c0_36] : memref<2x1x128xf32, #tpu.memory_space<vmem>>, vector<2x1x128xf32>
    tpu.vector_store %arg8[%c0_34, %c0_35, %c0_36], %25 {strides = array<i32>} : memref<2x1x128xf32, #tpu.memory_space<vmem>>, vector<2x1x128xf32>,
    %c0_i32_37 = arith.constant 0 : i32
    %46 = arith.cmpi eq, %arg1, %c0_i32_37 : i32
    %47 = arith.extui %46 : i1 to i32
    %c0_i32_38 = arith.constant 0 : i32
    %48 = arith.cmpi ne, %47, %c0_i32_38 : i32
    scf.if %48 {
      %c0_39 = arith.constant 0 : index
      %c0_40 = arith.constant 0 : index
      %c0_41 = arith.constant 0 : index
      %49 = vector.load %arg10[%c0_39, %c0_40, %c0_41] : memref<2x16x128xf32, #tpu.memory_space<vmem>>, vector<2x16x128xf32>
      %c0_42 = arith.constant 0 : index
      %c0_43 = arith.constant 0 : index
      %c0_44 = arith.constant 0 : index
      %50 = vector.load %arg9[%c0_42, %c0_43, %c0_44] : memref<2x1x128xf32, #tpu.memory_space<vmem>>, vector<2x1x128xf32>
      %51 = tpu.reciprocal %50 {approx = true} : vector<2x1x128xf32> -> vector<2x1x128xf32>
      %52 = vector.broadcast %51 : vector<2x1x128xf32> to vector<2x16x128xf32>
      %53 = arith.mulf %49, %52 : vector<2x16x128xf32>
      %c1_45 = arith.constant 1 : index
      %c0_46 = arith.constant 0 : index
      %c0_47 = arith.constant 0 : index
      %c0_48 = arith.constant 0 : index
      %54 = vector.load %arg5[%c1_45, %c0_46, %c0_47, %c0_48] : memref<2x2x16x1xf32, #tpu.memory_space<vmem>>, vector<1x2x16x1xf32>
      %55 = vector.shape_cast %54 : vector<1x2x16x1xf32> to vector<2x16x1xf32>
      %56 = vector.broadcast %55 : vector<2x16x1xf32> to vector<2x16x128xf32>
      %57 = arith.addf %53, %56 : vector<2x16x128xf32>
      %cst_49 = arith.constant 0.000000e+00 : f32
      %58 = vector.broadcast %cst_49 : f32 to vector<2x16x128xf32>
      %59 = arith.maximumf %57, %58 : vector<2x16x128xf32>
      %c0_50 = arith.constant 0 : index
      %c0_51 = arith.constant 0 : index
      %c0_52 = arith.constant 0 : index
      %c0_53 = arith.constant 0 : index
      %60 = vector.load %arg6[%c0_50, %c0_51, %c0_52, %c0_53] : memref<1x2x16x128xf32, #tpu.memory_space<vmem>>, vector<1x2x16x128xf32>
      %61 = vector.shape_cast %60 : vector<1x2x16x128xf32> to vector<2x16x128xf32>
      %62 = vector.shape_cast %59 : vector<2x16x128xf32> to vector<1x2x16x128xf32>
      tpu.vector_store %arg6[%c0_50, %c0_51, %c0_52, %c0_53], %62 {strides = array<i32>} : memref<1x2x16x128xf32, #tpu.memory_space<vmem>>, vector<1x2x16x128xf32>,
    } else {
    }
    return
  }
  func.func @transform_0(%arg0: i32, %arg1: i32) -> (i32, i32, i32, i32) {
    %c0_i32 = arith.constant 0 : i32
    %c0_i32_0 = arith.constant 0 : i32
    %c0_i32_1 = arith.constant 0 : i32
    %c0_i32_2 = arith.constant 0 : i32
    return %arg0, %c0_i32, %c0_i32_0, %c0_i32_1 : i32, i32, i32, i32
  }
  func.func @transform_1(%arg0: i32, %arg1: i32) -> (i32, i32, i32, i32) {
    %c0_i32 = arith.constant 0 : i32
    %c0_i32_0 = arith.constant 0 : i32
    %c0_i32_1 = arith.constant 0 : i32
    return %arg0, %c0_i32, %arg1, %c0_i32_0 : i32, i32, i32, i32
  }
  func.func @transform_2(%arg0: i32, %arg1: i32) -> (i32, i32, i32, i32) {
    %c0_i32 = arith.constant 0 : i32
    %c0_i32_0 = arith.constant 0 : i32
    %c0_i32_1 = arith.constant 0 : i32
    %c0_i32_2 = arith.constant 0 : i32
    %c0_i32_3 = arith.constant 0 : i32
    return %c0_i32, %c0_i32_0, %c0_i32_1, %c0_i32_2 : i32, i32, i32, i32
  }
  func.func @transform_3(%arg0: i32, %arg1: i32) -> (i32, i32, i32, i32) {
    %c0_i32 = arith.constant 0 : i32
    %c0_i32_0 = arith.constant 0 : i32
    %c0_i32_1 = arith.constant 0 : i32
    %c0_i32_2 = arith.constant 0 : i32
    %c0_i32_3 = arith.constant 0 : i32
    return %c0_i32, %c0_i32_0, %c0_i32_1, %c0_i32_2 : i32, i32, i32, i32
  }
  func.func @transform_4(%arg0: i32, %arg1: i32) -> (i32, i32, i32, i32) {
    %c0_i32 = arith.constant 0 : i32
    %c0_i32_0 = arith.constant 0 : i32
    %c0_i32_1 = arith.constant 0 : i32
    %c0_i32_2 = arith.constant 0 : i32
    return %arg0, %c0_i32, %c0_i32_0, %c0_i32_1 : i32, i32, i32, i32
  }
}

</mosaic_0001>

<bundles_post_ra>
// kernel: tpu_custom_call.1
= control target key start
LH: loop header
LB: loop body
LE: loop exit
PB: predicated region body
PF: predicated region fallthrough
CT: control target
= control target key end

     0   :  { %9 = vsyncpa [#allocation7], 0  ;;  %s2724_s0 = inlined_call_operand.vmem [shape: bf16[2,2,16,128], index: 0, kind: input, shape index: {}]   ;;  %s2725_s1 = inlined_call_operand.vmem [shape: bf16[2,2,128,16], index: 1, kind: input, shape index: {}]   ;;  %s2726_s2 = inlined_call_operand.vmem [shape: bf16[3,2,16,16], index: 2, kind: input, shape index: {}]   ;;  %s2727_s3 = inlined_call_operand.vmem [shape: f32[2,2,16,1], index: 3, kind: input, shape index: {}]   ;;  %s2728_s4 = inlined_call_operand.hbm [shape: f32[2,2,16,128], index: 4, kind: output, shape index: {}]  }
   0x1   :  { %11 = vsyncpa [#allocation7 + $0x1], 0  ;;  %s2307_s15 = smov 0   ;;  %s2309_s16 = smov 0  }
   0x2   :  { %s2311_s17 = smov 0   ;;  %s2313_s18 = smov 0  }
   0x3   :  { %s2315_s19 = smov 0   ;;  %s2317_s20 = smov 0  }
   0x4 LB: > { %s1732_s21 = sadd.s32 4294967295, %s2273_s20   ;;  %s1733_s22 = sadd.s32 4294967294, %s2273_s20   ;;  %s2273_s20 = sphi %s2317_s20, %s17_s20   ;;  %s2269_s19 = sphi %s2315_s19, %s2735_s19   ;;  %s2265_s18 = sphi %s2313_s18, %s2734_s18   ;;  %s2261_s17 = sphi %s2311_s17, %s2733_s17   ;;  %s2257_s16 = sphi %s2309_s16, %s2732_s16   ;;  %s2253_s15 = sphi %s2307_s15, %s2731_s15  }
   0x5   : > { %s29_s23 = sadd.s32 1, %s2269_s19  ;;  %s132_s24 = sadd.s32 1, %s2261_s17 }
   0x6   : > { %p31_p0 = scmp.ge.s32.totalorder %s29_s23, 2  ;;  %p142_p1 = scmp.ne.s32.totalorder %s2261_s17, %s2257_s16 }
   0x7   : > { %p143_p2 = scmp.eq.s32.totalorder %s1732_s21, 1  ;;  %p148_p3 = scmp.ne.s32.totalorder %s2257_s16, %s2253_s15 }
   0x8   : > { %s2737_s23 = smov (%p31_p0, %s29_s23), 0  ;;  %p149_p5 = scmp.eq.s32.totalorder %s1733_s22, 1 }
   0x9   : > { %p2347_p4 = por %p143_p2, %p142_p1  ;;  %s129_s26 = ssub.s32 %s2269_s19, %s2737_s23 }
   0xa   : > { %p1736_p6 = scmp.ge.s32.totalorder %s2273_s20, 1  ;;  %p130_p7 = scmp.eq.s32.totalorder %s129_s26, 0 }
   0xb   : > { %p2354_p8 = por %p149_p5, %p148_p3  ;;  %p194_p9 = scmp.lt.s32.totalorder %s2273_s20, 3 }
   0xc   : > { %s2360_s28 = scalar_select %p130_p7, %s2261_s17, %s132_s24  }
   0xd   : > { %p195_p10 = pnand %p1736_p6, %p194_p9 }
   0xe   : > { %p229_p11 = scmp.lt.s32.totalorder (!%p195_p10), %s2265_s18, 1  ;;  %v2275_v0 = vmov (!%p195_p10), 0.0   ;;  %vm2276_vm0 = vmmov (!%p195_p10), 0   ;;  %v2131_v1 = vld [vmem:[%s2726_s2 + $0x10] sm:$0xff] (!%p195_p10)   ;;  %v2129_v3 = vld [vmem:[%s2726_s2] sm:$0xff] (!%p195_p10)   ;;  %v2132_v4 = vld [vmem:[%s2726_s2 + $0x18] sm:$0xff] (!%p195_p10)  }
   0xf   : > { %198 = sbr.rel (%p195_p10) target bundleno = 809 (0x329), region = 36  ;;  %1898 = vmatprep.subr.bf16.mxu0 (!%p195_p10), %v2275_v0  ;;  %398 = vst [vmem:[#allocation4] sm:$0x1] (!%p195_p10), %v2275_v0  ;;  %399 = vst [vmem:[#allocation4 + $0x1] sm:$0x1] (!%p195_p10), %v2275_v0  ;;  %1904 = vmatprep.subr.bf16.mxu1 (!%p195_p10), %v2275_v0  ;;  %v259_v2 = vld [vmem:[%s2727_s3 + $0x10] sm:$0xff] (!%p195_p10) }
  0x10   : > { %1900 = vmatprep.mubr.msk.bf16.mxu0 (!%p195_p10), %vm2276_vm0, %v2275_v0  ;;  %1906 = vmatprep.mubr.msk.bf16.mxu1 (!%p195_p10), %vm2276_vm0, %v2275_v0  ;;  %v2277_v5 = vmov (!%p195_p10), 0   ;;  %v257_v6 = vld [vmem:[%s2727_s3] sm:$0xff] (!%p195_p10)  ;;  %v260_v7 = vld [vmem:[%s2727_s3 + $0x18] sm:$0xff] (!%p195_p10)  ;;  %v2130_v9 = vld [vmem:[%s2726_s2 + $0x8] sm:$0xff] (!%p195_p10)   ;;  %vm292_vm1 = vcmask (!%p195_p10), 130048   ;;  %s226_s8 = sand.u32 (!%p195_p10), 1, %s2257_s16  }
  0x11   : > { %2126 = vset.pattern.permute.xlu1 (!%p195_p10), %v2277_v5  ;;  %2125 = vset.pattern.permute.xlu0 (!%p195_p10), %v2277_v5  ;;  %v258_v10 = vld [vmem:[%s2727_s3 + $0x8] sm:$0xff] (!%p195_p10)  ;;  %v512_v14 = vsel (!%p195_p10), %vm292_vm1, %v2131_v1, 0  ;;  %v681_v15 = vsel (!%p195_p10), %vm292_vm1, %v2132_v4, 0  ;;  %v1810_v17 = vld [vmem:[%s2727_s3 + $0x20] sm:$0xff] (!%p195_p10)  ;;  %v1813_v19 = vld [vmem:[%s2727_s3 + $0x38] sm:$0xff] (!%p195_p10)  ;;  %s1737_s9 = sshll.u32 (!%p195_p10), %s226_s8, 5 }
  0x12   : > { %273 = vperm.xlu1 (!%p195_p10), %2126, %v259_v2   ;;  %263 = vperm.xlu0 (!%p195_p10), %2125, %v257_v6   ;;  %v1811_v16 = vld [vmem:[%s2727_s3 + $0x28] sm:$0xff] (!%p195_p10)  ;;  %v1812_v20 = vld [vmem:[%s2727_s3 + $0x30] sm:$0xff] (!%p195_p10)  ;;  %v2149_v50 = vld [vmem:[%s2726_s2 + $0x20] sm:$0xff] (!%p195_p10)   ;;  %s228_s10 = scalar_lea.vmem (!%p195_p10), [#allocation6], %s1737_s9  ;;  %s2678_s24 = scalar_lea.sflag (!%p195_p10), [#allocation7], %s226_s8 }
  0x13   : > { %v2150_v51 = vld [vmem:[%s2726_s2 + $0x28] sm:$0xff] (!%p195_p10)   ;;  %s1644_s11 = sshll.u32 (!%p195_p10), %s228_s10, 4  ;;  %s2279_s26 = smov (!%p195_p10), [#allocation6]   ;;  %s2674_s11 = int_to_ptr.vmem [resolvable:$true] %s1644_s11 }
  0x16   : > { %s230_s29 = scalar_select %p229_p11, %s2265_s18, 1  ;;  %278 = vperm.xlu1 %2126, %v260_v7   ;;  %268 = vperm.xlu0 %2125, %v258_v10  }
  0x18   : > { %s1819_s30 = sshll.u32 %s230_s29, 4  ;;  %s1820_s5 = sshll.u32 %s230_s29, 7 }
  0x19   : > { %s233_s12 = scalar_lea.vmem %s2724_s0, %s1819_s30  ;;  %s2384_s21 = scalar_lea.vmem %s2725_s1, %s1820_s5 }
  0x1a   : > { %v2127_v8 = vld [vmem:[%s233_s12] sm:$0xff]   ;;  %v2128_v11 = vld [vmem:[%s233_s12 + $0x8] sm:$0xff]   ;;  %1605 = vperm.xlu1 %2126, %v1811_v16   ;;  %1600 = vperm.xlu0 %2125, %v1810_v17   ;;  %v2137_v22 = vld [vmem:[%s2384_s21 + $0x10] sm:$0xff]   ;;  %s1821_s12 = sshll.u32 %s2265_s18, 9  ;;  %s2195_s18 = scalar_lea.vmem %s2674_s11, 512 }
  0x1b   : > { %1899 = vmatpush3.bf16.msra.mxu0 %v2127_v8  ;;  %v2133_v12 = vld [vmem:[%s2384_s21] sm:$0xff]   ;;  %1905 = vmatpush3.bf16.msra.mxu1 %v2128_v11  ;;  %v2135_v18 = vld [vmem:[%s2384_s21 + $0x8] sm:$0xff]   ;;  %v2138_v23 = vld [vmem:[%s2384_s21 + $0x50] sm:$0xff]   ;;  %v494_v33 = vsel %vm292_vm1, %v2137_v22, 0  ;;  %s2672_s22 = scalar_lea.hbm %s2728_s4, %s1821_s12  ;;  %p2196_p12 = scmp.ne.s32.totalorder %s2674_s11, %s2195_s18 }
  0x1c   : > { %2062 = vmatprep.subr.msk.bf16.mxu0 %vm292_vm1, %v2131_v1  ;;  %v2134_v13 = vld [vmem:[%s2384_s21 + $0x40] sm:$0xff]   ;;  %2063 = vmatprep.subr.msk.bf16.mxu1 %vm292_vm1, %v2132_v4  ;;  %v2136_v21 = vld [vmem:[%s2384_s21 + $0x48] sm:$0xff]   ;;  %v488_v24 = vsel %vm292_vm1, %v2133_v12, 0  ;;  %v2139_v26 = vld [vmem:[%s2384_s21 + $0x18] sm:$0xff]   ;;  %v491_v28 = vsel %vm292_vm1, %v2135_v18, 0  ;;  %v663_v36 = vsel %vm292_vm1, %v2138_v23, 0 }
  0x1d   : > { %v657_v25 = vsel %vm292_vm1, %v2134_v13, 0  ;;  %v2140_v27 = vld [vmem:[%s2384_s21 + $0x58] sm:$0xff]   ;;  %v2141_v29 = vld [vmem:[%s2384_s21 + $0x20] sm:$0xff]   ;;  %v660_v30 = vsel %vm292_vm1, %v2136_v21, 0  ;;  %v2143_v32 = vld [vmem:[%s2384_s21 + $0x28] sm:$0xff]   ;;  %v497_v40 = vsel %vm292_vm1, %v2139_v26, 0  ;;  %p2197_p13 = pnand %p2196_p12, %p2347_p4 }
  0x1e   : > { %1901 = vmatmul.mubr.msk.bf16.vlgmr.msra.gmra.mrb[0].mxu0 %vm292_vm1, %v2129_v3  ;;  %1907 = vmatmul.mubr.msk.bf16.vlgmr.msra.gmra.mrb[0].mxu1 %vm292_vm1, %v2130_v9  ;;  %v2142_v31 = vld [vmem:[%s2384_s21 + $0x60] sm:$0xff]   ;;  %v2144_v34 = vld [vmem:[%s2384_s21 + $0x68] sm:$0xff]   ;;  %v2145_v35 = vld [vmem:[%s2384_s21 + $0x30] sm:$0xff]   ;;  %v666_v41 = vsel %vm292_vm1, %v2140_v27, 0  ;;  %v500_v42 = vsel %vm292_vm1, %v2141_v29, 0  ;;  %v503_v44 = vsel %vm292_vm1, %v2143_v32, 0 }
  0x1f   : > { %1912 = vmatprep.mubr.msk.bf16.mxu0 %vm292_vm1, %v2133_v12  ;;  %1930 = vmatprep.mubr.msk.bf16.mxu1 %vm292_vm1, %v2134_v13  ;;  %v2146_v37 = vld [vmem:[%s2384_s21 + $0x70] sm:$0xff]   ;;  %v2147_v38 = vld [vmem:[%s2384_s21 + $0x38] sm:$0xff]   ;;  %v669_v43 = vsel %vm292_vm1, %v2142_v31, 0  ;;  %v672_v45 = vsel %vm292_vm1, %v2144_v34, 0  ;;  %v506_v46 = vsel %vm292_vm1, %v2145_v35, 0  ;;  %p2198_p0 = pneg %p2197_p13  ;;  %s2199_s29 = sshll.u32 %s2279_s26, 4  ;;  %s2200_s29 = int_to_ptr.vmem [resolvable:$false] %s2199_s29 }
  0x20   : > { %1615 = vperm.xlu1 %2126, %v1813_v19   ;;  %1610 = vperm.xlu0 %2125, %v1812_v20   ;;  %v2148_v39 = vld [vmem:[%s2384_s21 + $0x78] sm:$0xff]   ;;  %v675_v47 = vsel %vm292_vm1, %v2146_v37, 0  ;;  %v509_v48 = vsel %vm292_vm1, %v2147_v38, 0  ;;  %s2201_s6 = scalar_lea.vmem %s2200_s29, 1024  ;;  %p2202_p1 = scmp.lt.s32.totalorder %s2674_s11, %s2200_s29 }
  0x21   : > { %v678_v49 = vsel %vm292_vm1, %v2148_v39, 0  ;;  %p2203_p2 = scmp.lt.s32.totalorder %s2201_s6, %s2195_s18 }
  0x23   : > { %p2204_p3 = por %p2203_p2, %p2202_p1 }
  0x24   : > { %1911 = vmatpush3.bf16.xpose.msra.mxu0 %v512_v14  ;;  %1929 = vmatpush3.bf16.xpose.msra.mxu1 %v681_v15 }
  0x25   : > { %1946 = vmatprep.subr.bf16.mxu0 %v2275_v0  ;;  %1966 = vmatprep.subr.bf16.mxu1 %v2275_v0  ;;  %p2205_p5 = pnand %p2204_p3, %p2198_p0 }
  0x2b   : > { %1913 = vmatmul.mubr.msk.bf16.vlgmr.msra.gmra.mrb[4].mxu0 %vm292_vm1, %v2135_v18  ;;  %1931 = vmatmul.mubr.msk.bf16.vlgmr.msra.gmra.mrb[4].mxu1 %vm292_vm1, %v2136_v21 }
  0x2c   : > { %1916 = vmatprep.mubr.msk.bf16.mxu0 %vm292_vm1, %v2137_v22  ;;  %1934 = vmatprep.mubr.msk.bf16.mxu1 %vm292_vm1, %v2138_v23 }
  0x2d   : > { %1947 = vmatpush3.bf16.xpose.msra.mxu0 %v488_v24  ;;  %1967 = vmatpush3.bf16.xpose.msra.mxu1 %v657_v25 }
  0x2e   : > { %1948 = vmatprep.subr.bf16.mxu0 %v2275_v0  ;;  %1968 = vmatprep.subr.bf16.mxu1 %v2275_v0 }
  0x33   : > { %1917 = vmatmul.mubr.msk.bf16.gmra.mrb[8].mxu0 %vm292_vm1, %v2139_v26  ;;  %1935 = vmatmul.mubr.msk.bf16.gmra.mrb[8].mxu1 %vm292_vm1, %v2140_v27 }
  0x34   : > { %1920 = vmatprep.mubr.msk.bf16.mxu0 %vm292_vm1, %v2141_v29  ;;  %1938 = vmatprep.mubr.msk.bf16.mxu1 %vm292_vm1, %v2142_v31 }
  0x35   : > { %1949 = vmatpush3.bf16.xpose.msra.mxu0 %v491_v28  ;;  %1969 = vmatpush3.bf16.xpose.msra.mxu1 %v660_v30 }
  0x36   : > { %1950 = vmatprep.subr.bf16.mxu0 %v2275_v0  ;;  %1970 = vmatprep.subr.bf16.mxu1 %v2275_v0 }
  0x3b   : > { %1921 = vmatmul.mubr.msk.bf16.gmra.mrb[12].mxu0 %vm292_vm1, %v2143_v32  ;;  %1939 = vmatmul.mubr.msk.bf16.gmra.mrb[12].mxu1 %vm292_vm1, %v2144_v34 }
  0x3c   : > { %1924 = vmatprep.mubr.msk.bf16.mxu0 %vm292_vm1, %v2145_v35  ;;  %1942 = vmatprep.mubr.msk.bf16.mxu1 %vm292_vm1, %v2146_v37 }
  0x3d   : > { %1951 = vmatpush3.bf16.xpose.msra.mxu0 %v494_v33  ;;  %1971 = vmatpush3.bf16.xpose.msra.mxu1 %v663_v36 }
  0x3e   : > { %1952 = vmatprep.subr.bf16.mxu0 %v2275_v0  ;;  %1972 = vmatprep.subr.bf16.mxu1 %v2275_v0 }
  0x43   : > { %1925 = vmatmul.mubr.msk.bf16.gmra.mrb[16].mxu0 %vm292_vm1, %v2147_v38  ;;  %1943 = vmatmul.mubr.msk.bf16.gmra.mrb[16].mxu1 %vm292_vm1, %v2148_v39 }
  0x44   : > { %1962 = vmatprep.mubr.msk.bf16.mxu0 %vm2276_vm0, %v2275_v0  ;;  %1982 = vmatprep.mubr.msk.bf16.mxu1 %vm2276_vm0, %v2275_v0 }
  0x45   : > { %1953 = vmatpush3.bf16.xpose.msra.mxu0 %v497_v40  ;;  %1973 = vmatpush3.bf16.xpose.msra.mxu1 %v666_v41 }
  0x46   : > { %1954 = vmatprep.subr.bf16.mxu0 %v2275_v0  ;;  %1974 = vmatprep.subr.bf16.mxu1 %v2275_v0 }
  0x4d   : > { %1955 = vmatpush3.bf16.xpose.msra.mxu0 %v500_v42  ;;  %1975 = vmatpush3.bf16.xpose.msra.mxu1 %v669_v43 }
  0x4e   : > { %1956 = vmatprep.subr.bf16.mxu0 %v2275_v0  ;;  %1976 = vmatprep.subr.bf16.mxu1 %v2275_v0 }
  0x55   : > { %1957 = vmatpush3.bf16.xpose.msra.mxu0 %v503_v44  ;;  %1977 = vmatpush3.bf16.xpose.msra.mxu1 %v672_v45 }
  0x56   : > { %1958 = vmatprep.subr.bf16.mxu0 %v2275_v0  ;;  %1978 = vmatprep.subr.bf16.mxu1 %v2275_v0 }
  0x5d   : > { %1959 = vmatpush3.bf16.xpose.msra.mxu0 %v506_v46  ;;  %1979 = vmatpush3.bf16.xpose.msra.mxu1 %v675_v47 }
  0x5e   : > { %1960 = vmatprep.subr.bf16.mxu0 %v2275_v0  ;;  %1980 = vmatprep.subr.bf16.mxu1 %v2275_v0 }
  0x65   : > { %1961 = vmatpush3.bf16.xpose.msra.mxu0 %v509_v48  ;;  %1981 = vmatpush3.bf16.xpose.msra.mxu1 %v678_v49 }
  0x6c   : > { %1963 = vmatmul.mubr.msk.bf16.vlgmr.msra.gmra.mrb[20].mxu0 %vm292_vm1, %v2149_v50  ;;  %1983 = vmatmul.mubr.msk.bf16.vlgmr.msra.gmra.mrb[20].mxu1 %vm292_vm1, %v2150_v51 }
  0x91   : > { %v274_v52 = vpop.permute.xlu1 %273  ;;  %v264_v53 = vpop.permute.xlu0 %263 }
  0x95   : > { %v279_v54 = vpop.permute.xlu1 %278  ;;  %v269_v55 = vpop.permute.xlu0 %268 }
  0xf1   : > { %v330_v56 = vpop.f32.mrb[0].mxu0  ;;  %v385_v58 = vpop.f32.mrb[0].mxu1 }
  0xf2   : > { %v331_v57 = vadd.f32 %v330_v56, %v264_v53  ;;  %v1902_v59 = vpop.f32.mrb[1].mxu0  ;;  %v386_v60 = vadd.f32 %v385_v58, %v274_v52  ;;  %v1908_v61 = vpop.f32.mrb[1].mxu1 }
  0xf3   : > { %v333_v62 = vpop.f32.mrb[2].mxu0  ;;  %v388_v1 = vpop.f32.mrb[2].mxu1 }
  0xf4   : > { %v334_v63 = vadd.f32 %v333_v62, %v269_v55  ;;  %v1903_v2 = vpop.f32.mrb[3].mxu0  ;;  %v389_v3 = vadd.f32 %v388_v1, %v279_v54  ;;  %v1909_v4 = vpop.f32.mrb[3].mxu1 }
  0xf5   : > { %v2278_v2 = vmov -1e+30  }
  0xf6   : > { %v392_v5 = vpack.c.bf16 %v334_v63, %v331_v57  ;;  %v393_v6 = vpack.c.bf16 %v389_v3, %v386_v60  ;;  %396 = vst [vmem:[#allocation3] sm:$0x1] %v2278_v2  ;;  %397 = vst [vmem:[#allocation3 + $0x1] sm:$0x1] %v2278_v2 }
  0xf8   : > { %1986 = vmatprep.subr.bf16.mxu0 %v392_v5  ;;  %2004 = vmatprep.subr.bf16.mxu1 %v393_v6 }
  0xf9   : > { %1987 = vmatpush3.bf16.msra.mxu0 %v392_v5  ;;  %2005 = vmatpush3.bf16.msra.mxu1 %v393_v6 }
  0xfa   : > { %2022 = vmatprep.subr.bf16.mxu0 %v2275_v0  ;;  %2042 = vmatprep.subr.bf16.mxu1 %v2275_v0 }
  0xfe   : > { %v1914_v7 = vpop.f32.mrb[4].mxu0  ;;  %v1932_v8 = vpop.f32.mrb[4].mxu1 }
  0xff   : > { %v548_v9 = vpop.f32.mrb[5].mxu0  ;;  %v717_v10 = vpop.f32.mrb[5].mxu1 }
 0x100   : > { %v1915_v11 = vpop.f32.mrb[6].mxu0  ;;  %v1933_v13 = vpop.f32.mrb[6].mxu1 }
 0x101   : > { %v884_v12 = vpack.c.bf16 %v1915_v11, %v1914_v7  ;;  %v551_v14 = vpop.f32.mrb[7].mxu0  ;;  %v892_v15 = vpack.c.bf16 %v1933_v13, %v1932_v8  ;;  %v720_v17 = vpop.f32.mrb[7].mxu1 }
 0x102   : > { %v883_v16 = vpack.c.bf16 %v551_v14, %v548_v9  ;;  %v891_v18 = vpack.c.bf16 %v720_v17, %v717_v10 }
 0x104   : > { %1988 = vmatprep.mubr.msk.bf16.mxu0 %vm292_vm1, %v883_v16  ;;  %2006 = vmatprep.mubr.msk.bf16.mxu1 %vm292_vm1, %v891_v18 }
 0x105   : > { %1989 = vmatmul.mubr.msk.bf16.vlgmr.msra.gmra.mrb[24].mxu0 %vm292_vm1, %v884_v12  ;;  %2007 = vmatmul.mubr.msk.bf16.vlgmr.msra.gmra.mrb[24].mxu1 %vm292_vm1, %v892_v15 }
 0x106   : > { %v1918_v19 = vpop.f32.mrb[8].mxu0  ;;  %v1936_v20 = vpop.f32.mrb[8].mxu1 }
 0x107   : > { %v564_v21 = vpop.f32.mrb[9].mxu0  ;;  %v733_v22 = vpop.f32.mrb[9].mxu1 }
 0x108   : > { %v1919_v23 = vpop.f32.mrb[10].mxu0  ;;  %v1937_v25 = vpop.f32.mrb[10].mxu1 }
 0x109   : > { %v886_v24 = vpack.c.bf16 %v1919_v23, %v1918_v19  ;;  %v567_v26 = vpop.f32.mrb[11].mxu0  ;;  %v894_v27 = vpack.c.bf16 %v1937_v25, %v1936_v20  ;;  %v736_v29 = vpop.f32.mrb[11].mxu1 }
 0x10a   : > { %v885_v28 = vpack.c.bf16 %v567_v26, %v564_v21  ;;  %v893_v30 = vpack.c.bf16 %v736_v29, %v733_v22 }
 0x10c   : > { %1992 = vmatprep.mubr.msk.bf16.mxu0 %vm292_vm1, %v885_v28  ;;  %2010 = vmatprep.mubr.msk.bf16.mxu1 %vm292_vm1, %v893_v30 }
 0x10d   : > { %1993 = vmatmul.mubr.msk.bf16.gmra.mrb[28].mxu0 %vm292_vm1, %v886_v24  ;;  %2011 = vmatmul.mubr.msk.bf16.gmra.mrb[28].mxu1 %vm292_vm1, %v894_v27 }
 0x10e   : > { %v1922_v31 = vpop.f32.mrb[12].mxu0  ;;  %v1940_v32 = vpop.f32.mrb[12].mxu1 }
 0x10f   : > { %v580_v33 = vpop.f32.mrb[13].mxu0  ;;  %v749_v34 = vpop.f32.mrb[13].mxu1 }
 0x110   : > { %v1923_v35 = vpop.f32.mrb[14].mxu0  ;;  %v1941_v37 = vpop.f32.mrb[14].mxu1 }
 0x111   : > { %v888_v36 = vpack.c.bf16 %v1923_v35, %v1922_v31  ;;  %v583_v38 = vpop.f32.mrb[15].mxu0  ;;  %v896_v39 = vpack.c.bf16 %v1941_v37, %v1940_v32  ;;  %v752_v41 = vpop.f32.mrb[15].mxu1 }
 0x112   : > { %v887_v40 = vpack.c.bf16 %v583_v38, %v580_v33  ;;  %v895_v42 = vpack.c.bf16 %v752_v41, %v749_v34 }
 0x114   : > { %1996 = vmatprep.mubr.msk.bf16.mxu0 %vm292_vm1, %v887_v40  ;;  %2014 = vmatprep.mubr.msk.bf16.mxu1 %vm292_vm1, %v895_v42 }
 0x115   : > { %1997 = vmatmul.mubr.msk.bf16.gmra.mrb[32].mxu0 %vm292_vm1, %v888_v36  ;;  %2015 = vmatmul.mubr.msk.bf16.gmra.mrb[32].mxu1 %vm292_vm1, %v896_v39 }
 0x116   : > { %v1926_v43 = vpop.f32.mrb[16].mxu0  ;;  %v1944_v44 = vpop.f32.mrb[16].mxu1 }
 0x117   : > { %v596_v45 = vpop.f32.mrb[17].mxu0  ;;  %v765_v46 = vpop.f32.mrb[17].mxu1 }
 0x118   : > { %v1927_v47 = vpop.f32.mrb[18].mxu0  ;;  %v1945_v49 = vpop.f32.mrb[18].mxu1 }
 0x119   : > { %v890_v48 = vpack.c.bf16 %v1927_v47, %v1926_v43  ;;  %v599_v50 = vpop.f32.mrb[19].mxu0  ;;  %v898_v51 = vpack.c.bf16 %v1945_v49, %v1944_v44  ;;  %v768_v53 = vpop.f32.mrb[19].mxu1 }
 0x11a   : > { %v889_v52 = vpack.c.bf16 %v599_v50, %v596_v45  ;;  %v897_v54 = vpack.c.bf16 %v768_v53, %v765_v46 }
 0x11c   : > { %2000 = vmatprep.mubr.msk.bf16.mxu0 %vm292_vm1, %v889_v52  ;;  %2018 = vmatprep.mubr.msk.bf16.mxu1 %vm292_vm1, %v897_v54 }
 0x11d   : > { %2001 = vmatmul.mubr.msk.bf16.gmra.mrb[36].mxu0 %vm292_vm1, %v890_v48  ;;  %2019 = vmatmul.mubr.msk.bf16.gmra.mrb[36].mxu1 %vm292_vm1, %v898_v51 }
 0x11e   : > { %2038 = vmatprep.mubr.msk.bf16.mxu0 %vm2276_vm0, %v2275_v0  ;;  %2058 = vmatprep.mubr.msk.bf16.mxu1 %vm2276_vm0, %v2275_v0 }
 0x13f   : > { %v2520_v55 = vpop.f32.mrb[20].mxu0  ;;  %v2522_v56 = vpop.f32.mrb[20].mxu1 }
 0x140   : > { %v1964_v57 = vpop.f32.mrb[21].mxu0  ;;  %v1984_v58 = vpop.f32.mrb[21].mxu1 }
 0x141   : > { %v2524_v59 = vpop.f32.mrb[22].mxu0  ;;  %v2526_v60 = vpop.f32.mrb[22].mxu1 }
 0x142   : > { %v1456_v61 = vpack.c.bf16 %v2524_v59, %v2520_v55  ;;  %v1457_v62 = vpack.c.bf16 %v2526_v60, %v2522_v56  ;;  %v1965_v63 = vpop.f32.mrb[23].mxu0  ;;  %v1985_v1 = vpop.f32.mrb[23].mxu1 }
 0x1d8   : > { %v2532_v3 = vpop.f32.mrb[24].mxu0  ;;  %v2534_v4 = vpop.f32.mrb[24].mxu1 }
 0x1d9   : > { %v2536_v5 = vpop.f32.mrb[25].mxu0  ;;  %v2540_v7 = vpop.f32.mrb[25].mxu1 }
 0x1da   : > { %v1228_v6 = vmax.f32 %v2536_v5, %v2532_v3  ;;  %v2542_v8 = vpop.f32.mrb[26].mxu0  ;;  %v1249_v9 = vmax.f32 %v2540_v7, %v2534_v4  ;;  %v2546_v10 = vpop.f32.mrb[26].mxu1 }
 0x1db   : > { %v2548_v11 = vpop.f32.mrb[27].mxu0  ;;  %v2552_v13 = vpop.f32.mrb[27].mxu1 }
 0x1dc   : > { %v1229_v12 = vmax.f32 %v2548_v11, %v2542_v8  ;;  %v1250_v14 = vmax.f32 %v2552_v13, %v2546_v10 }
 0x1e0   : > { %v2556_v15 = vpop.f32.mrb[28].mxu0  ;;  %v2558_v16 = vpop.f32.mrb[28].mxu1 }
 0x1e1   : > { %v2560_v17 = vpop.f32.mrb[29].mxu0  ;;  %v2563_v19 = vpop.f32.mrb[29].mxu1 }
 0x1e2   : > { %v1230_v18 = vmax.f32 %v1228_v6, %v2560_v17  ;;  %v2565_v20 = vpop.f32.mrb[30].mxu0  ;;  %v1251_v21 = vmax.f32 %v1249_v9, %v2563_v19  ;;  %v2568_v22 = vpop.f32.mrb[30].mxu1 }
 0x1e3   : > { %v2570_v23 = vpop.f32.mrb[31].mxu0  ;;  %v2574_v26 = vpop.f32.mrb[31].mxu1 }
 0x1e4   : > { %v1232_v24 = vmax.f32 %v1230_v18, %v2556_v15  ;;  %v1231_v25 = vmax.f32 %v1229_v12, %v2570_v23  ;;  %v1253_v27 = vmax.f32 %v1251_v21, %v2558_v16  ;;  %v1252_v28 = vmax.f32 %v1250_v14, %v2574_v26 }
 0x1e6   : > { %v1234_v29 = vmax.f32 %v1232_v24, -1e+30  ;;  %v1233_v30 = vmax.f32 %v1231_v25, %v2565_v20  ;;  %v1255_v31 = vmax.f32 %v1253_v27, -1e+30  ;;  %v1254_v32 = vmax.f32 %v1252_v28, %v2568_v22 }
 0x1e7   : > { %v1280_v25 = vlaneseq }
 0x1e8   : > { %v1236_v33 = vmax.f32 %v1234_v29, -1e+30  ;;  %v1235_v34 = vmax.f32 %v1233_v30, -1e+30  ;;  %v1998_v35 = vpop.f32.mrb[32].mxu0  ;;  %v2016_v38 = vpop.f32.mrb[32].mxu1 }
 0x1e9   : > { %v1257_v36 = vmax.f32 %v1255_v31, -1e+30  ;;  %v1256_v37 = vmax.f32 %v1254_v32, -1e+30  ;;  %v991_v39 = vpop.f32.mrb[33].mxu0  ;;  %v1112_v42 = vpop.f32.mrb[33].mxu1 }
 0x1ea   : > { %v1238_v40 = vmax.f32 %v1236_v33, -1e+30  ;;  %v1237_v41 = vmax.f32 %v1235_v34, -1e+30  ;;  %v1999_v43 = vpop.f32.mrb[34].mxu0  ;;  %v2017_v46 = vpop.f32.mrb[34].mxu1 }
 0x1eb   : > { %v1259_v44 = vmax.f32 %v1257_v36, -1e+30  ;;  %v1258_v45 = vmax.f32 %v1256_v37, -1e+30  ;;  %v994_v47 = vpop.f32.mrb[35].mxu0  ;;  %v1115_v49 = vpop.f32.mrb[35].mxu1 }
 0x1ec   : > { %v1239_v48 = vmax.f32 %v1237_v41, -1e+30  ;;  %v1240_v51 = vmax.f32 %v1238_v40, -1e+30  ;;  %v1281_v32 = vshrl.u32 %v1280_v25, 7 }
 0x1ed   : > { %v1260_v50 = vmax.f32 %v1258_v45, -1e+30  ;;  %v1261_v53 = vmax.f32 %v1259_v44, -1e+30  ;;  %v2580_v35 = vld [vmem:[#allocation3] sm:$0x1] }
 0x1ee   : > { %v1241_v52 = vmax.f32 %v1239_v48, -1e+30  ;;  %v2582_v38 = vsub.s32 0, %v1281_v32  ;;  %v2584_v39 = vld [vmem:[#allocation3 + $0x1] sm:$0x1] }
 0x1ef   : > { %v1262_v54 = vmax.f32 %v1260_v50, -1e+30 }
 0x1f0   : > { %v1242_v57 = vmax.f32 %v1240_v51, %v1241_v52  ;;  %v2002_v58 = vpop.f32.mrb[36].mxu0  ;;  %v2020_v1 = vpop.f32.mrb[36].mxu1 }
 0x1f1   : > { %v1263_v63 = vmax.f32 %v1261_v53, %v1262_v54  ;;  %v1007_v2 = vpop.f32.mrb[37].mxu0  ;;  %v1128_v9 = vpop.f32.mrb[37].mxu1 }
 0x1f2   : > { %v1243_v6 = vrot.slane %v1242_v57, 4  ;;  %v2003_v12 = vpop.f32.mrb[38].mxu0  ;;  %v2021_v18 = vpop.f32.mrb[38].mxu1 }
 0x1f3   : > { %v1264_v14 = vrot.slane %v1263_v63, 4  ;;  %v1010_v21 = vpop.f32.mrb[39].mxu0  ;;  %v1131_v27 = vpop.f32.mrb[39].mxu1 }
 0x1f4   : > { %v1244_v24 = vmax.f32 %v1242_v57, %v1243_v6 }
 0x1f5   : > { %v1265_v28 = vmax.f32 %v1263_v63, %v1264_v14 }
 0x1f6   : > { %v1245_v29 = vrot.slane %v1244_v24, 2 }
 0x1f7   : > { %v1266_v30 = vrot.slane %v1265_v28, 2 }
 0x1f8   : > { %v1246_v31 = vmax.f32 %v1244_v24, %v1245_v29 }
 0x1f9   : > { %v1267_v33 = vmax.f32 %v1265_v28, %v1266_v30 }
 0x1fa   : > { %v1247_v34 = vrot.slane %v1246_v31, 1 }
 0x1fb   : > { %v1268_v36 = vrot.slane %v1267_v33, 1 }
 0x1fc   : > { %v1248_v37 = vmax.f32 %v1246_v31, %v1247_v34 }
 0x1fd   : > { %v1269_v40 = vmax.f32 %v1267_v33, %v1268_v36 }
 0x1fe   : > { %v2587_v41 = vmax.f32 %v2580_v35, %v1248_v37 }
 0x1ff   : > { %v2590_v42 = vmax.f32 %v2584_v39, %v1269_v40 }
 0x200   : > { %v1283_v43 = vrot.slane %v2587_v41, %v2582_v38  ;;  %1564 = vst [vmem:[#allocation3] sm:$0x1] %v2587_v41 }
 0x201   : > { %v2597_v44 = vrot.slane %v2590_v42, %v2582_v38  ;;  %1565 = vst [vmem:[#allocation3 + $0x1] sm:$0x1] %v2590_v42 }
 0x202   : > { %v1290_v45 = vsub.f32 %v2536_v5, %v1283_v43  ;;  %v1291_v46 = vsub.f32 %v2548_v11, %v1283_v43  ;;  %v1292_v47 = vsub.f32 %v2532_v3, %v1283_v43  ;;  %v1293_v48 = vsub.f32 %v2542_v8, %v1283_v43 }
 0x203   : > { %v1294_v49 = vsub.f32 %v2560_v17, %v1283_v43  ;;  %v1295_v50 = vsub.f32 %v2570_v23, %v1283_v43  ;;  %v1296_v51 = vsub.f32 %v2556_v15, %v1283_v43  ;;  %v1297_v52 = vsub.f32 %v2565_v20, %v1283_v43 }
 0x204   : > { %v1322_v53 = vmul.f32 1.442695, %v1290_v45  ;;  %v1324_v54 = vmul.f32 1.442695, %v1291_v46  ;;  %v1306_v57 = vsub.f32 %v2540_v7, %v2597_v44  ;;  %v1326_v5 = vmul.f32 1.442695, %v1292_v47 }
 0x205   : > { %v1328_v58 = vmul.f32 1.442695, %v1293_v48  ;;  %v1307_v3 = vsub.f32 %v2552_v13, %v2597_v44  ;;  %v1298_v11 = vsub.f32 -1e+30, %v1283_v43  ;;  %v1330_v8 = vmul.f32 1.442695, %v1294_v49 }
 0x206   : > { %2151 = vpow2.f32 %v1322_v53  ;;  %v1332_v17 = vmul.f32 1.442695, %v1295_v50  ;;  %v1334_v23 = vmul.f32 1.442695, %v1296_v51  ;;  %v1308_v15 = vsub.f32 %v2534_v4, %v2597_v44 }
 0x207   : > { %2153 = vpow2.f32 %v1324_v54  ;;  %v1309_v20 = vsub.f32 %v2546_v10, %v2597_v44  ;;  %v1310_v7 = vsub.f32 %v2563_v19, %v2597_v44  ;;  %v1311_v63 = vsub.f32 %v2574_v26, %v2597_v44 }
 0x208   : > { %2155 = vpow2.f32 %v1326_v5  ;;  %v1312_v13 = vsub.f32 %v2558_v16, %v2597_v44  ;;  %v1336_v1 = vmul.f32 1.442695, %v1297_v52  ;;  %v1313_v2 = vsub.f32 %v2568_v22, %v2597_v44 }
 0x209   : > { %2157 = vpow2.f32 %v1328_v58  ;;  %v1338_v4 = vmul.f32 1.442695, %v1298_v11  ;;  %v1354_v6 = vmul.f32 1.442695, %v1306_v57  ;;  %v1356_v10 = vmul.f32 1.442695, %v1307_v3 }
 0x20a   : > { %2159 = vpow2.f32 %v1330_v8  ;;  %v1358_v9 = vmul.f32 1.442695, %v1308_v15  ;;  %v1360_v19 = vmul.f32 1.442695, %v1309_v20  ;;  %v1362_v26 = vmul.f32 1.442695, %v1310_v7 }
 0x20b   : > { %2161 = vpow2.f32 %v1332_v17  ;;  %v1364_v16 = vmul.f32 1.442695, %v1311_v63  ;;  %v1366_v18 = vmul.f32 1.442695, %v1312_v13  ;;  %v1368_v24 = vmul.f32 1.442695, %v1313_v2 }
 0x20c   : > { %2163 = vpow2.f32 %v1334_v23  ;;  %v1314_v34 = vsub.f32 -1e+30, %v2597_v44 }
 0x20d   : > { %2165 = vpow2.f32 %v1336_v1 }
 0x20e   : > { %2167 = vpow2.f32 %v1338_v4  ;;  %v1370_v49 = vmul.f32 1.442695, %v1314_v34 }
 0x20f   : > { %2169 = vpow2.f32 %v1354_v6  ;;  %v1272_v6 = vsub.f32 %v2580_v35, %v2587_v41 }
 0x210   : > { %v2152_v12 = vpop.eup %2151  ;;  %2171 = vpow2.f32 %v1356_v10 }
 0x211   : > { %v2154_v14 = vpop.eup %2153  ;;  %2173 = vpow2.f32 %v1358_v9 }
 0x212   : > { %v2156_v21 = vpop.eup %2155  ;;  %v1390_v22 = vadd.f32 %v2154_v14, %v2152_v12  ;;  %2175 = vpow2.f32 %v1360_v19  ;;  %v1458_v25 = vpack.c.bf16 %v2154_v14, %v2152_v12 }
 0x213   : > { %v2158_v27 = vpop.eup %2157  ;;  %2177 = vpow2.f32 %v1362_v26 }
 0x214   : > { %v2160_v28 = vpop.eup %2159  ;;  %v1391_v29 = vadd.f32 %v2156_v21, %v1390_v22  ;;  %2179 = vpow2.f32 %v1364_v16  ;;  %2023 = vmatpush3.bf16.msra.mxu0 %v1458_v25  ;;  %v1459_v30 = vpack.c.bf16 %v2158_v27, %v2156_v21  ;;  %v1274_v16 = vmul.f32 1.442695, %v1272_v6 }
 0x215   : > { %v2162_v31 = vpop.eup %2161  ;;  %2181 = vpow2.f32 %v1366_v18  ;;  %2024 = vmatprep.subr.bf16.mxu0 %v2275_v0 }
 0x216   : > { %v2164_v32 = vpop.eup %2163  ;;  %v1392_v33 = vadd.f32 %v2158_v27, %v1391_v29  ;;  %2183 = vpow2.f32 %v1368_v24  ;;  %v1460_v36 = vpack.c.bf16 %v2162_v31, %v2160_v28  ;;  %v1273_v24 = vsub.f32 %v2584_v39, %v2590_v42 }
 0x217   : > { %v2166_v37 = vpop.eup %2165  ;;  %2185 = vpow2.f32 %v1370_v49 }
 0x218   : > { %v2626_v40 = vpop.eup %2167  ;;  %v1393_v43 = vadd.f32 %v2160_v28, %v1392_v33  ;;  %2025 = vmatpush3.bf16.msra.mxu0 %v1459_v30  ;;  %v1461_v45 = vpack.c.bf16 %v2166_v37, %v2164_v32  ;;  %2187 = vpow2.f32 %v1274_v16  ;;  %v1276_v30 = vmul.f32 1.442695, %v1273_v24 }
 0x219   : > { %v2170_v46 = vpop.eup %2169  ;;  %2026 = vmatprep.subr.bf16.mxu0 %v2275_v0  ;;  %v1462_v13 = vpack.c.bf16 %v2626_v40, %v2626_v40 }
 0x21a   : > { %v2172_v47 = vpop.eup %2171  ;;  %v1394_v48 = vadd.f32 %v2162_v31, %v1393_v43  ;;  %2189 = vpow2.f32 %v1276_v30 }
 0x21b   : > { %v2174_v50 = vpop.eup %2173  ;;  %v1411_v51 = vadd.f32 %v2172_v47, %v2170_v46  ;;  %v1466_v52 = vpack.c.bf16 %v2172_v47, %v2170_v46  ;;  %v1387_v47 = vld [vmem:[#allocation4 + $0x1] sm:$0x1] }
 0x21c   : > { %v2176_v53 = vpop.eup %2175  ;;  %v1395_v54 = vadd.f32 %v2164_v32, %v1394_v48  ;;  %2027 = vmatpush3.bf16.msra.mxu0 %v1460_v36  ;;  %v1386_v36 = vld [vmem:[#allocation4] sm:$0x1] }
 0x21d   : > { %v2178_v44 = vpop.eup %2177  ;;  %v1412_v57 = vadd.f32 %v2174_v50, %v1411_v51  ;;  %2043 = vmatpush3.bf16.msra.mxu1 %v1466_v52  ;;  %v1467_v5 = vpack.c.bf16 %v2176_v53, %v2174_v50  ;;  %2028 = vmatprep.subr.bf16.mxu0 %v2275_v0 }
 0x21e   : > { %v2180_v58 = vpop.eup %2179  ;;  %v1396_v3 = vadd.f32 %v2166_v37, %v1395_v54  ;;  %2044 = vmatprep.subr.bf16.mxu1 %v2275_v0 }
 0x21f   : > { %v2182_v11 = vpop.eup %2181  ;;  %v1413_v8 = vadd.f32 %v2176_v53, %v1412_v57  ;;  %v1468_v17 = vpack.c.bf16 %v2180_v58, %v2178_v44 }
 0x220   : > { %v2184_v23 = vpop.eup %2183  ;;  %v1397_v15 = vadd.f32 %v2626_v40, %v1396_v3  ;;  %2029 = vmatpush3.bf16.msra.mxu0 %v1461_v45 }
 0x221   : > { %v1414_v20 = vadd.f32 %v2178_v44, %v1413_v8  ;;  %2045 = vmatpush3.bf16.msra.mxu1 %v1467_v5  ;;  %v1469_v7 = vpack.c.bf16 %v2184_v23, %v2182_v11  ;;  %2030 = vmatprep.subr.bf16.mxu0 %v2275_v0  ;;  %v2186_v19 = vpop.eup %2185 }
 0x222   : > { %v1398_v63 = vadd.f32 %v2626_v40, %v1397_v15  ;;  %2046 = vmatprep.subr.bf16.mxu1 %v2275_v0  ;;  %v1470_v35 = vpack.c.bf16 %v2186_v19, %v2186_v19  ;;  %v2188_v42 = vpop.eup %2187 }
 0x223   : > { %v1415_v1 = vadd.f32 %v2180_v58, %v1414_v20  ;;  %v1388_v43 = vmul.f32 %v2188_v42, %v1386_v36  ;;  %v1445_v54 = vrot.slane %v2188_v42, %v2582_v38 }
 0x224   : > { %v1399_v2 = vadd.f32 %v2626_v40, %v1398_v63  ;;  %2031 = vmatpush3.bf16.msra.mxu0 %v1462_v13 }
 0x225   : > { %v1416_v4 = vadd.f32 %v2182_v11, %v1415_v1  ;;  %2047 = vmatpush3.bf16.msra.mxu1 %v1468_v17  ;;  %2032 = vmatprep.subr.bf16.mxu0 %v2275_v0  ;;  %v1452_v60 = vmul.f32 0.0, %v1445_v54  ;;  %v1601_v17 = vpop.permute.xlu0 %1600 }
 0x226   : > { %v1400_v10 = vadd.f32 %v2626_v40, %v1399_v2  ;;  %2048 = vmatprep.subr.bf16.mxu1 %v2275_v0 }
 0x227   : > { %v1417_v9 = vadd.f32 %v2184_v23, %v1416_v4 }
 0x228   : > { %v1401_v26 = vadd.f32 %v2626_v40, %v1400_v10  ;;  %2033 = vmatpush3.bf16.msra.mxu0 %v1462_v13 }
 0x229   : > { %v1418_v12 = vadd.f32 %v2186_v19, %v1417_v9  ;;  %2049 = vmatpush3.bf16.msra.mxu1 %v1469_v7  ;;  %2034 = vmatprep.subr.bf16.mxu0 %v2275_v0  ;;  %v1606_v7 = vpop.permute.xlu1 %1605 }
 0x22a   : > { %v1402_v14 = vadd.f32 %v2626_v40, %v1401_v26  ;;  %2050 = vmatprep.subr.bf16.mxu1 %v2275_v0 }
 0x22b   : > { %v1419_v18 = vadd.f32 %v2186_v19, %v1418_v12 }
 0x22c   : > { %v1403_v41 = vadd.f32 %v2626_v40, %v1402_v14  ;;  %2035 = vmatpush3.bf16.msra.mxu0 %v1462_v13 }
 0x22d   : > { %v1420_v21 = vadd.f32 %v2186_v19, %v1419_v18  ;;  %2051 = vmatpush3.bf16.msra.mxu1 %v1470_v35  ;;  %2036 = vmatprep.subr.bf16.mxu0 %v2275_v0  ;;  %v1611_v18 = vpop.permute.xlu0 %1610 }
 0x22e   : > { %v1404_v22 = vadd.f32 %v2626_v40, %v1403_v41  ;;  %2052 = vmatprep.subr.bf16.mxu1 %v2275_v0 }
 0x22f   : > { %v1421_v25 = vadd.f32 %v2186_v19, %v1420_v21  ;;  %v1616_v21 = vpop.permute.xlu1 %1615 }
 0x230   : > { %2037 = vmatpush3.bf16.msra.mxu0 %v1462_v13  ;;  %v1405_v27 = vrot.slane %v1404_v22, 4 }
 0x231   : > { %v1422_v28 = vadd.f32 %v2186_v19, %v1421_v25  ;;  %2053 = vmatpush3.bf16.msra.mxu1 %v1470_v35 }
 0x232   : > { %2054 = vmatprep.subr.bf16.mxu1 %v2275_v0  ;;  %v1406_v29 = vadd.f32 %v1405_v27, %v1404_v22 }
 0x233   : > { %v1423_v31 = vadd.f32 %v2186_v19, %v1422_v28  ;;  %2039 = vmatmul.mubr.bf16.vlgmr.msra.gmra.mrb[40].mxu0 %v1456_v61  ;;  %v2190_v61 = vpop.eup %2189 }
 0x234   : > { %v1407_v32 = vrot.slane %v1406_v29, 2  ;;  %v1389_v49 = vmul.f32 %v2190_v61, %v1387_v47  ;;  %v1449_v23 = vrot.slane %v2190_v61, %v2582_v38 }
 0x235   : > { %v1424_v33 = vadd.f32 %v2186_v19, %v1423_v31  ;;  %2055 = vmatpush3.bf16.msra.mxu1 %v1470_v35 }
 0x236   : > { %2056 = vmatprep.subr.bf16.mxu1 %v2275_v0  ;;  %v1408_v39 = vadd.f32 %v1407_v32, %v1406_v29  ;;  %v1454_v2 = vmul.f32 0.0, %v1449_v23 }
 0x237   : > { %v1425_v34 = vadd.f32 %v2186_v19, %v1424_v33 }
 0x238   : > { %v1409_v37 = vrot.slane %v1408_v39, 1 }
 0x239   : > { %2057 = vmatpush3.bf16.msra.mxu1 %v1470_v35  ;;  %v1426_v40 = vrot.slane %v1425_v34, 4 }
 0x23a   : > { %v1410_v45 = vadd.f32 %v1409_v37, %v1408_v39 }
 0x23b   : > { %v1427_v46 = vadd.f32 %v1426_v40, %v1425_v34 }
 0x23c   : > { %2059 = vmatmul.mubr.bf16.vlgmr.msra.gmra.mrb[40].mxu1 %v1457_v62  ;;  %v1432_v55 = vadd.f32 %v1410_v45, %v1388_v43 }
 0x23d   : > { %v1428_v59 = vrot.slane %v1427_v46, 2 }
 0x23e   : > { %1434 = vst [vmem:[#allocation4] sm:$0x1] %v1432_v55 }
 0x23f   : > { %v1429_v0 = vadd.f32 %v1428_v59, %v1427_v46 }
 0x241   : > { %v1430_v48 = vrot.slane %v1429_v0, 1 }
 0x243   : > { %v1431_v50 = vadd.f32 %v1430_v48, %v1429_v0 }
 0x245   : > { %v1433_v51 = vadd.f32 %v1431_v50, %v1389_v49  ;;  %v1573_v52 = vld [vmem:[#allocation4] sm:$0x1] }
 0x246   : > { %2191 = vrcp.f32 %v1573_v52 }
 0x247   : > { %1435 = vst [vmem:[#allocation4 + $0x1] sm:$0x1] %v1433_v51 }
 0x24e   : > { %v1574_v53 = vld [vmem:[#allocation4 + $0x1] sm:$0x1] }
 0x24f   : > { %2193 = vrcp.f32 %v1574_v53 }
 0x250   : > { %v2192_v56 = vpop.eup %2191 }
 0x251   : > { %v1582_v57 = vrot.slane %v2192_v56, %v2582_v38 }
 0x259   : > { %v2194_v63 = vpop.eup %2193 }
 0x25a   : > { %v1586_v9 = vrot.slane %v2194_v63, %v2582_v38 }
 0x306   : > { %v1508_v62 = vpop.f32.mrb[40].mxu0 }
 0x307   : > { %v1556_v44 = vadd.f32 %v1508_v62, %v1452_v60  ;;  %v2040_v5 = vpop.f32.mrb[41].mxu0 }
 0x308   : > { %v1511_v58 = vpop.f32.mrb[42].mxu0 }
 0x309   : > { %v1589_v3 = vmul.f32 %v1582_v57, %v1556_v44  ;;  %v1557_v11 = vadd.f32 %v1511_v58, %v1452_v60  ;;  %v2041_v8 = vpop.f32.mrb[43].mxu0 }
 0x30b   : > { %v1618_v15 = vadd.f32 %v1601_v17, %v1589_v3  ;;  %v1590_v20 = vmul.f32 %v1582_v57, %v1557_v11 }
 0x30d   : > { %v1622_v13 = vmax.f32 %v1618_v15, 0.0  ;;  %v1619_v1 = vadd.f32 %v1606_v7, %v1590_v20 }
 0x30f   : > { %1626 = vst [vmem:[%s228_s10] sm:$0xff] %v1622_v13  ;;  %v1549_v4 = vpop.f32.mrb[40].mxu1  ;;  %v1623_v6 = vmax.f32 %v1619_v1, 0.0 }
 0x310   : > { %v1558_v10 = vadd.f32 %v1549_v4, %v1454_v2  ;;  %v2060_v19 = vpop.f32.mrb[41].mxu1 }
 0x311   : > { %1627 = vst [vmem:[%s228_s10 + $0x8] sm:$0xff] %v1623_v6  ;;  %v1552_v26 = vpop.f32.mrb[42].mxu1 }
 0x312   : > { %v1591_v12 = vmul.f32 %v1586_v9, %v1558_v10  ;;  %v1559_v16 = vadd.f32 %v1552_v26, %v1454_v2  ;;  %v2061_v14 = vpop.f32.mrb[43].mxu1 }
 0x314   : > { %v1620_v35 = vadd.f32 %v1611_v18, %v1591_v12  ;;  %v1592_v41 = vmul.f32 %v1586_v9, %v1559_v16 }
 0x316   : > { %v1624_v22 = vmax.f32 %v1620_v35, 0.0  ;;  %v1621_v24 = vadd.f32 %v1616_v21, %v1592_v41 }
 0x318   : > { %1628 = vst [vmem:[%s228_s10 + $0x10] sm:$0xff] %v1624_v22  ;;  %v1625_v38 = vmax.f32 %v1621_v24, 0.0 }
 0x31a   : > { %1629 = vst [vmem:[%s228_s10 + $0x18] sm:$0xff] %v1625_v38 }
 0x31b   : > { %2208 = shalt.err (!%p2205_p5)
}
 0x31c   : > { %s2209_s21 = scalar_lea.hbm %s2672_s22, 512  ;;  %s2213_s5 = scalar_lea.hbm %s2728_s4, 1024 }
 0x31d   : > { %p2210_p6 = scmp.ne.s32.totalorder %s2672_s22, %s2209_s21  ;;  %p2214_p10 = scmp.lt.u32.totalorder %s2672_s22, %s2728_s4 }
 0x31e   : > { %p2215_p11 = scmp.lt.u32.totalorder %s2213_s5, %s2209_s21  ;;  %p2217_p13 = scmp.lt.u32.totalorder %s2209_s21, %s2672_s22 }
 0x31f   : > { %p2211_p7 = pnand %p2210_p6, %p2347_p4 }
 0x320   : > { %p2216_p12 = por %p2215_p11, %p2214_p10 }
 0x321   : > { %p2212_p9 = pneg %p2211_p7 }
 0x322   : > { %p2218_p0 = por %p2217_p13, %p2216_p12 }
 0x324   : > { %p2219_p1 = pnand %p2218_p0, %p2212_p9 }
 0x326   : > { %2222 = shalt.err (!%p2219_p1)
}
 0x327   : > { %s2280_s10 = smov 128   ;;  %s2281_s12 = smov 8  }
 0x328   : > { %2064 = dma.vmem_to_hbm [thread:$0]  (%p2347_p4), %s2674_s11, 512, %s2672_s22, %s2678_s24, %s2280_s10, %s2280_s10, %s2281_s12  }
 0x329 PF: > { %p2070_p2 = scmp.ge.s32.totalorder %s2273_s20, 2  ;;  %s1659_s13 = sand.u32 1, %s2253_s15  }
 0x32a   : > { %s1660_s14 = scalar_lea.sflag [#allocation7], %s1659_s13 }
 0x32b   : > { %p2067_p3 = pnand %p2070_p2, %p2354_p8 }
 0x32d   : > { %2248 = dma.done.wait (!%p2067_p3), %s1660_s14, 512  }
 0x32e   : > { %2250 = vsyncadd (!%p2067_p3), %s1660_s14, 4294966784  ;;  %s17_s20 = sadd.s32 1, %s2273_s20   ;;  %s2731_s15 = smov %s2257_s16 }
 0x32f   : > { %p14_p5 = scmp.ge.s32.totalorder %s17_s20, 4   ;;  %s2732_s16 = smov %s2261_s17 }
 0x330   : > { %s2733_s17 = smov %s2360_s28  ;;  %s2734_s18 = smov %s2269_s19 }
 0x331   : > { %s2735_s19 = smov %s2737_s23  ;;  %16 = sbr.rel (!%p14_p5) target bundleno = 4 (0x4), region = 85 }
 0x338   :  { %1665 = vsyncpa [#allocation7], 1 }
 0x339   :  { %1667 = vsyncpa [#allocation7 + $0x1], 1 }

</bundles_post_ra>
